<compile_context>
chip_gen: v7x
topology: tpu7x:2x2x1
jax: 0.10.0
libtpu: 0.0.40
codegen_flags: <defaults>
</compile_context>

<pallas_src>
import jax
import jax.numpy as jnp
from jax import lax
from jax.experimental import pallas as pl
from jax.experimental.pallas import tpu as pltpu


def _round_up(n, m):
    return ((n + m - 1) // m) * m


def _mlp3_kernel(x_ref, w_ref, b_ref, o_ref):
    # x: [TB, n_mlp], w: [2, n_mlp] (PyTorch layout), b: [2, 1] -> o: [2, TB]
    x = x_ref[...].astype(jnp.float32)
    w = w_ref[...].astype(jnp.float32)
    b = b_ref[...].astype(jnp.float32)

    # z[c, t] = sum_k w[c, k] * x[t, k]  -> [2, TB], batch lane-dense, f32 accumulate.
    z = lax.dot_general(
        w, x,
        dimension_numbers=(((1,), (1,)), ((), ())),
        preferred_element_type=jnp.float32,
    ) + b

    # LeakyReLU (PyTorch default negative_slope = 0.01)
    a = jnp.where(z >= 0, z, 0.01 * z)

    # 2-class softmax done pairwise on lane-dense [1, TB] rows:
    # no cross-lane max/sum reductions, one reciprocal per pair of outputs.
    a0 = a[0:1, :]
    a1 = a[1:2, :]
    m = jnp.maximum(a0, a1)
    e0 = jnp.exp(a0 - m)
    e1 = jnp.exp(a1 - m)
    inv = pl.reciprocal(e0 + e1, approx=False)  # exact: keeps 1e-5 allclose tight
    o_ref[0:1, :] = (e0 * inv).astype(o_ref.dtype)
    o_ref[1:2, :] = (e1 * inv).astype(o_ref.dtype)


def mlp3_forward(x, w, b, *, tb=2048):
    """x: [B, n_mlp] f32, w: [2, n_mlp] f32 (PyTorch Linear layout), b: [2] f32 -> [B, 2]."""
    B, n_mlp = x.shape
    assert w.shape[0] == 2 and w.shape[1] == n_mlp
    assert b.shape == (2,)

    # Batch tile: multiple of 128 (lane width), capped so 2x double-buffered x tiles
    # stay far below the v5e/v7x scoped-VMEM limits.
    tb = max(128, min(tb, _round_up(B, 128)))
    b_pad = _round_up(B, tb)
    if b_pad != B:
        x = jnp.pad(x, ((0, b_pad - B), (0, 0)))
    b2 = b.reshape(2, 1)

    out_t = pl.pallas_call(
        _mlp3_kernel,
        out_shape=jax.ShapeDtypeStruct((2, b_pad), x.dtype),
        grid_spec=pltpu.PrefetchScalarGridSpec(
            num_scalar_prefetch=0,
            grid=(b_pad // tb,),
            in_specs=[
                pl.BlockSpec((tb, n_mlp), lambda i: (i, 0)),   # x tile over batch
                pl.BlockSpec((2, n_mlp), lambda i: (0, 0)),    # full weight (tiny)
                pl.BlockSpec((2, 1), lambda i: (0, 0)),        # bias
            ],
            out_specs=pl.BlockSpec((2, tb), lambda i: (0, i)),  # lane-dense output
        ),
        compiler_params=pltpu.CompilerParams(
            dimension_semantics=("parallel",)),  # shards batch across v7x's 2 TCs
    )(x, w, b2)

    # Back to PyTorch layout [B, 2]; slice off batch padding. Tiny (B x 2) transpose.
    return out_t[:, :B].T


if __name__ == "__main__":
    n_mlp = 32
    batch = 8

    key = jax.random.PRNGKey(0)
    kx, kw, kb = jax.random.split(key, 3)

    # Deterministic parameter init (mimics nn.Linear's uniform(-1/sqrt(fan_in), +)).
    bound = 1.0 / (n_mlp ** 0.5)
    # PyTorch Linear weight layout: [out_features=2, in_features=n_mlp].
    w = jax.random.uniform(kw, (2, n_mlp), jnp.float32, -bound, bound)
    b = jax.random.uniform(kb, (2,), jnp.float32, -bound, bound)
    x = jax.random.normal(kx, (batch, n_mlp), jnp.float32)

    out = jax.block_until_ready(mlp3_forward(x, w, b))

    # Reference check in plain JAX (matches the PyTorch forward).
    z_ref = x @ w.T + b
    z_ref = jnp.where(z_ref >= 0, z_ref, 0.01 * z_ref)
    ref = jax.nn.softmax(z_ref, axis=1)

    assert out.shape == (batch, 2)
    assert jnp.allclose(out, ref, atol=1e-5, rtol=1e-5)

    print("KERNEL_OK")
</pallas_src>

<mosaic_0001>
module attributes {stable_mosaic.version = 11 : i64} {
  func.func @_mlp3_kernel(%arg0: i32, %arg1: memref<128x32xf32, #tpu.memory_space<vmem>>, %arg2: memref<2x32xf32, #tpu.memory_space<vmem>>, %arg3: memref<2x1xf32, #tpu.memory_space<vmem>>, %arg4: memref<2x128xf32, #tpu.memory_space<vmem>>) attributes {dimension_semantics = [#tpu.dimension_semantics<parallel>], iteration_bounds = array<i64: 1>, scalar_prefetch = 0 : i64, scratch_operands = 0 : i64, tpu.core_type = #tpu.core_type<tc>, window_params = [{transform_indices = @transform_0, window_bounds = array<i64: 128, 32>}, {pipeline_mode = #tpu.pipeline_mode<synchronous>, transform_indices = @transform_1, window_bounds = array<i64: 2, 32>}, {pipeline_mode = #tpu.pipeline_mode<synchronous>, transform_indices = @transform_2, window_bounds = array<i64: 2, 1>}, {transform_indices = @transform_3, window_bounds = array<i64: 2, 128>}]} {
    %c0 = arith.constant 0 : index
    %c0_0 = arith.constant 0 : index
    %0 = vector.load %arg1[%c0, %c0_0] : memref<128x32xf32, #tpu.memory_space<vmem>>, vector<128x32xf32>
    %c0_1 = arith.constant 0 : index
    %c0_2 = arith.constant 0 : index
    %1 = vector.load %arg2[%c0_1, %c0_2] : memref<2x32xf32, #tpu.memory_space<vmem>>, vector<2x32xf32>
    %c0_3 = arith.constant 0 : index
    %c0_4 = arith.constant 0 : index
    %2 = vector.load %arg3[%c0_3, %c0_4] : memref<2x1xf32, #tpu.memory_space<vmem>>, vector<2x1xf32>
    %cst = arith.constant dense<0.000000e+00> : vector<2x128xf32>
    %3 = tpu.matmul %1, %0, %cst {dimension_numbers = #tpu.dot_dimension_numbers<[1], [1], [0], [0], [0, 0, 1, 0], [], []>} : vector<2x32xf32>, vector<128x32xf32>, vector<2x128xf32> -> vector<2x128xf32>
    %4 = vector.broadcast %2 : vector<2x1xf32> to vector<2x128xf32>
    %5 = arith.addf %3, %4 : vector<2x128xf32>
    %cst_5 = arith.constant 0.000000e+00 : f32
    %6 = vector.broadcast %cst_5 : f32 to vector<2x128xf32>
    %7 = arith.cmpf oge, %5, %6 : vector<2x128xf32>
    %cst_6 = arith.constant 0.00999999977 : f32
    %8 = vector.broadcast %cst_6 : f32 to vector<2x128xf32>
    %9 = arith.mulf %8, %5 : vector<2x128xf32>
    %10 = arith.select %7, %5, %9 : vector<2x128xi1>, vector<2x128xf32>
    %11 = vector.extract_strided_slice %10 {offsets = [0, 0], sizes = [1, 128], strides = [1, 1]} : vector<2x128xf32> to vector<1x128xf32>
    %12 = vector.extract_strided_slice %10 {offsets = [1, 0], sizes = [1, 128], strides = [1, 1]} : vector<2x128xf32> to vector<1x128xf32>
    %13 = arith.maximumf %11, %12 : vector<1x128xf32>
    %14 = arith.subf %11, %13 : vector<1x128xf32>
    %15 = math.exp %14 : vector<1x128xf32>
    %16 = arith.subf %12, %13 : vector<1x128xf32>
    %17 = math.exp %16 : vector<1x128xf32>
    %18 = arith.addf %15, %17 : vector<1x128xf32>
    %19 = tpu.reciprocal %18 : vector<1x128xf32> -> vector<1x128xf32>
    %20 = arith.mulf %15, %19 : vector<1x128xf32>
    %c0_7 = arith.constant 0 : index
    %c0_8 = arith.constant 0 : index
    %21 = vector.load %arg4[%c0_7, %c0_8] : memref<2x128xf32, #tpu.memory_space<vmem>>, vector<1x128xf32>
    tpu.vector_store %arg4[%c0_7, %c0_8], %20 {strides = array<i32>} : memref<2x128xf32, #tpu.memory_space<vmem>>, vector<1x128xf32>,
    %22 = arith.mulf %17, %19 : vector<1x128xf32>
    %c1 = arith.constant 1 : index
    %c0_9 = arith.constant 0 : index
    %23 = vector.load %arg4[%c1, %c0_9] : memref<2x128xf32, #tpu.memory_space<vmem>>, vector<1x128xf32>
    tpu.vector_store %arg4[%c1, %c0_9], %22 {strides = array<i32>} : memref<2x128xf32, #tpu.memory_space<vmem>>, vector<1x128xf32>,
    return
  }
  func.func @transform_0(%arg0: i32) -> (i32, i32) {
    %c0_i32 = arith.constant 0 : i32
    %c0_i32_0 = arith.constant 0 : i32
    return %arg0, %c0_i32 : i32, i32
  }
  func.func @transform_1(%arg0: i32) -> (i32, i32) {
    %c0_i32 = arith.constant 0 : i32
    %c0_i32_0 = arith.constant 0 : i32
    %c0_i32_1 = arith.constant 0 : i32
    return %c0_i32, %c0_i32_0 : i32, i32
  }
  func.func @transform_2(%arg0: i32) -> (i32, i32) {
    %c0_i32 = arith.constant 0 : i32
    %c0_i32_0 = arith.constant 0 : i32
    %c0_i32_1 = arith.constant 0 : i32
    return %c0_i32, %c0_i32_0 : i32, i32
  }
  func.func @transform_3(%arg0: i32) -> (i32, i32) {
    %c0_i32 = arith.constant 0 : i32
    %c0_i32_0 = arith.constant 0 : i32
    return %c0_i32, %arg0 : i32, i32
  }
}

</mosaic_0001>

<bundles_post_ra>
// kernel: tpu_custom_call.1
= control target key start
LH: loop header
LB: loop body
LE: loop exit
PB: predicated region body
PF: predicated region fallthrough
CT: control target
= control target key end

     0   :  { %vm38_vm0 = vcmask 261120   ;;  %v339_v2 = vmov 0.0|0.0   ;;  %vm340_vm2 = vmmov 0   ;;  %v341_v5 = vmov 0.0   ;;  %s453_s0 = inlined_call_operand.vmem [shape: f32[128,32], index: 0, kind: input, shape index: {}]   ;;  %s454_s1 = inlined_call_operand.vmem [shape: f32[2,32], index: 1, kind: input, shape index: {}]   ;;  %s455_s2 = inlined_call_operand.vmem [shape: f32[2,1], index: 2, kind: input, shape index: {}]   ;;  %s456_s3 = inlined_call_operand.hbm [shape: f32[2,128], index: 3, kind: output, shape index: {}]  }
   0x1   :  { %v15_v0 = vld [vmem:[%s453_s0] sm:$0xff]  ;;  %v16_v1 = vld [vmem:[%s453_s0 + $0x8] sm:$0xff]  ;;  %271 = vmatprep.subr.bf16.mxu0 %v339_v2  ;;  %vm372_vm1 = vmpackc.low %vm38_vm0, %vm38_vm0  ;;  %268 = vmatprep.mubr.msk.f32.mxu0 %vm340_vm2, %v341_v5  ;;  %v342_v6 = vmov 0  }
   0x2   :  { %v272_v3 = vpack.c.bf16 %v16_v1, %v15_v0  ;;  %308 = vset.pattern.permute.xlu0 %v342_v6  ;;  %v17_v7 = vld [vmem:[%s453_s0 + $0x10] sm:$0xff]  ;;  %v18_v8 = vld [vmem:[%s453_s0 + $0x18] sm:$0xff]  ;;  %v32_v9 = vld [vmem:[%s455_s2] sm:$0x3] }
   0x4   :  { %274 = vmatpush3.bf16.xpose.msk.msra.mxu0 %vm372_vm1, %v272_v3 }
   0x5   :  { %275 = vmatprep.subr.bf16.mxu0 %v339_v2 }
   0x6   :  { %8 = vsyncpa [#allocation3], 0  ;;  %v276_v10 = vpack.c.bf16 %v18_v8, %v17_v7  ;;  %35 = vperm.xlu0 %308, %v32_v9   ;;  %v19_v11 = vld [vmem:[%s453_s0 + $0x20] sm:$0xff]  ;;  %v20_v12 = vld [vmem:[%s453_s0 + $0x28] sm:$0xff] }
   0x7   :  { %v280_v13 = vpack.c.bf16 %v20_v12, %v19_v11  ;;  %v21_v14 = vld [vmem:[%s453_s0 + $0x30] sm:$0xff]  ;;  %v22_v15 = vld [vmem:[%s453_s0 + $0x38] sm:$0xff]  ;;  %v23_v17 = vld [vmem:[%s453_s0 + $0x40] sm:$0xff] }
   0x8   :  { %v284_v16 = vpack.c.bf16 %v22_v15, %v21_v14  ;;  %v24_v18 = vld [vmem:[%s453_s0 + $0x48] sm:$0xff]  ;;  %v25_v20 = vld [vmem:[%s453_s0 + $0x50] sm:$0xff]  ;;  %v26_v21 = vld [vmem:[%s453_s0 + $0x58] sm:$0xff] }
   0x9   :  { %v288_v19 = vpack.c.bf16 %v24_v18, %v23_v17  ;;  %v292_v22 = vpack.c.bf16 %v26_v21, %v25_v20  ;;  %v27_v23 = vld [vmem:[%s453_s0 + $0x60] sm:$0xff]  ;;  %v28_v24 = vld [vmem:[%s453_s0 + $0x68] sm:$0xff]  ;;  %v29_v26 = vld [vmem:[%s453_s0 + $0x70] sm:$0xff] }
   0xa   :  { %v296_v25 = vpack.c.bf16 %v28_v24, %v27_v23  ;;  %v30_v27 = vld [vmem:[%s453_s0 + $0x78] sm:$0xff]  ;;  %v31_v29 = vld [vmem:[%s454_s1] sm:$0x3]  ;;  %s343_s0 = smov [#allocation2]  }
   0xb   :  { %v300_v28 = vpack.c.bf16 %v30_v27, %v29_v26  ;;  %s194_s1 = sshll.u32 %s343_s0, 4  ;;  %s195_s1 = int_to_ptr.vmem [resolvable:$true] %s194_s1 }
   0xc   :  { %278 = vmatpush3.bf16.xpose.msk.msra.mxu0 %vm372_vm1, %v276_v10  ;;  %s315_s20 = scalar_lea.vmem %s195_s1, 32  ;;  %p320_p1 = scmp.lt.s32.totalorder %s195_s1, %s195_s1 }
   0xd   :  { %279 = vmatprep.subr.bf16.mxu0 %v339_v2  ;;  %p316_p0 = scmp.ne.s32.totalorder %s195_s1, %s315_s20  ;;  %p321_p2 = scmp.lt.s32.totalorder %s315_s20, %s315_s20 }
   0xf   :  { %p322_p3 = por %p321_p2, %p320_p1 }
  0x11   :  { %p323_p4 = pnand %p322_p3, %p316_p0 }
  0x14   :  { %282 = vmatpush3.bf16.xpose.msk.msra.mxu0 %vm372_vm1, %v280_v13 }
  0x15   :  { %283 = vmatprep.subr.bf16.mxu0 %v339_v2 }
  0x1c   :  { %286 = vmatpush3.bf16.xpose.msk.msra.mxu0 %vm372_vm1, %v284_v16 }
  0x1d   :  { %287 = vmatprep.subr.bf16.mxu0 %v339_v2 }
  0x24   :  { %290 = vmatpush3.bf16.xpose.msk.msra.mxu0 %vm372_vm1, %v288_v19 }
  0x25   :  { %291 = vmatprep.subr.bf16.mxu0 %v339_v2 }
  0x2c   :  { %294 = vmatpush3.bf16.xpose.msk.msra.mxu0 %vm372_vm1, %v292_v22 }
  0x2d   :  { %295 = vmatprep.subr.bf16.mxu0 %v339_v2 }
  0x34   :  { %298 = vmatpush3.bf16.xpose.msk.msra.mxu0 %vm372_vm1, %v296_v25 }
  0x35   :  { %299 = vmatprep.subr.bf16.mxu0 %v339_v2 }
  0x3c   :  { %302 = vmatpush3.bf16.xpose.msk.msra.mxu0 %vm372_vm1, %v300_v28 }
  0x43   :  { %269 = vmatmul.mubr.msk.f32.vlgmr.msra.gmra.mrb[0].mxu0 %vm38_vm0, %v31_v29 }
  0x85   :  { %v36_v30 = vpop.permute.xlu0 %35 }
 0x116   :  { %v156_v31 = vpop.f32.mrb[0].mxu0 }
 0x117   :  { %v157_v32 = vadd.f32 %v156_v31, %v36_v30  ;;  %v270_v33 = vpop.f32.mrb[1].mxu0 }
 0x119   :  { %vm160_vm3 = vcmp.ge.f32.partialorder %v157_v32, 0.0  ;;  %v161_v34 = vmul.f32 0.01, %v157_v32 }
 0x11b   :  { %v162_v35 = vsel %vm160_vm3, %v157_v32, %v161_v34 }
 0x11c   :  { %v164_v36 = vrot.slane %v162_v35, 1 }
 0x11e   :  { %v166_v37 = vmax.f32 %v162_v35, %v164_v36 }
 0x120   :  { %v167_v38 = vsub.f32 %v162_v35, %v166_v37  ;;  %v171_v39 = vrot.slane %v166_v37, 7 }
 0x122   :  { %v173_v40 = vsub.f32 %v162_v35, %v171_v39  ;;  %v168_v41 = vmul.f32 1.442695, %v167_v38 }
 0x124   :  { %v174_v42 = vmul.f32 1.442695, %v173_v40 }
 0x126   :  { %309 = vpow2.f32 %v174_v42 }
 0x127   :  { %311 = vpow2.f32 %v168_v41 }
 0x130   :  { %v310_v43 = vpop.eup %309 }
 0x131   :  { %v177_v44 = vrot.slane %v310_v43, 1  ;;  %v312_v45 = vpop.eup %311 }
 0x133   :  { %v179_v46 = vadd.f32 %v312_v45, %v177_v44 }
 0x135   :  { %313 = vrcp.f32 %v179_v46 }
 0x13f   :  { %v314_v47 = vpop.eup %313 }
 0x140   :  { %v181_v48 = vmul.f32 %v314_v47, %v312_v45  ;;  %v184_v49 = vrot.slane %v314_v47, 7 }
 0x142   :  { %182 = vst [vmem:[#allocation2] sm:$0x1] %v181_v48  ;;  %v186_v50 = vmul.f32 %v310_v43, %v184_v49 }
 0x144   :  { %187 = vst [vmem:[#allocation2] sm:$0x2] %v186_v50 }
 0x145   :  { %326 = shalt.err (!%p323_p4)
}
 0x146   :  { %s327_s23 = scalar_lea.hbm %s456_s3, 32 }
 0x147   :  { %p328_p5 = scmp.ne.s32.totalorder %s456_s3, %s327_s23  ;;  %p331_p6 = scmp.lt.u32.totalorder %s327_s23, %s456_s3 }
 0x149   :  { %p333_p7 = pnand %p331_p6, %p328_p5 }
 0x14b   :  { %336 = shalt.err (!%p333_p7)
}
 0x14c   :  { %197 = dma.vmem_to_hbm [thread:$0]  %s195_s1, 32, %s456_s3, [#allocation3]  }
 0x14d   :  { %337 = dma.done.wait [#allocation3], 32  }
 0x14e   :  { %338 = vsyncadd [#allocation3], 4294967264 }
 0x14f   :  { %201 = vsyncpa [#allocation3], 1 }

</bundles_post_ra>
